<compile_context>
chip_gen: v7x
topology: tpu7x:2x2x1
jax: 0.10.0
libtpu: 0.0.40
codegen_flags: <defaults>
</compile_context>

<pallas_src>
import functools

import jax
import jax.numpy as jnp
from jax import lax
from jax.experimental import pallas as pl
from jax.experimental.pallas import tpu as pltpu


def _round_up(a: int, b: int) -> int:
    return (a + b - 1) // b * b


def grnn_kernel(x_ref, tx_ref, tt_ref, rhs_ref, o_ref,
                xx_ref, m_ref, acc_ref, *,
                neg_inv_two_sigma_sq, mxu_dtype):
    """One (B-tile, N-tile) grid step.

    x_ref   : [TB, F_pad]  query rows (resident across the N loop)
    tx_ref  : [TN, F_pad]  training-data tile
    tt_ref  : [1,  TN]     precomputed ||t_j||^2 (1e30 on padded rows)
    rhs_ref : [TN, 128]    lane 0 = y_j, lane 1 = 1.0, zeros elsewhere / padded
    o_ref   : [TB, 128]    lane 0 = numerator, lane 1 = denominator
    scratch : xx_ref [TB,1], m_ref [TB,1] (running max), acc_ref [TB,128]
    """
    n = pl.program_id(1)

    @pl.when(n == 0)
    def _init():
        xv = x_ref[...]
        xx_ref[...] = jnp.sum(xv * xv, axis=1, keepdims=True)       # ||x||^2 once per B tile
        m_ref[...] = jnp.full(m_ref.shape, -jnp.inf, dtype=m_ref.dtype)
        acc_ref[...] = jnp.zeros(acc_ref.shape, dtype=acc_ref.dtype)

    # dist_sq[i, j] = ||x_i||^2 + ||t_j||^2 - 2 x_i . t_j  (clamped at 0)
    x_mx = x_ref[...].astype(mxu_dtype)
    t_mx = tx_ref[...].astype(mxu_dtype)
    xt = lax.dot_general(x_mx, t_mx, (((1,), (1,)), ((), ())),
                         preferred_element_type=jnp.float32)         # [TB, TN]
    dist_sq = jnp.maximum(xx_ref[...] + tt_ref[...] - 2.0 * xt, 0.0)  # [TB, TN]

    # Exponent with the 1/(2 sigma^2) factor folded in as a single constant mul.
    s = dist_sq * neg_inv_two_sigma_sq                                # [TB, TN]

    # Online (flash-style) rescaling so weights never underflow relative to the
    # per-row max; the shift cancels exactly in numerator / denominator.
    m_prev = m_ref[...]                                               # [TB, 1]
    m_new = jnp.maximum(m_prev, jnp.max(s, axis=1, keepdims=True))    # [TB, 1]
    alpha = jnp.exp(m_prev - m_new)                                   # [TB, 1]
    p = jnp.exp(s - m_new)                                            # [TB, TN]

    # One MXU matmul produces both numerator (lane 0) and denominator (lane 1).
    acc_ref[...] = alpha * acc_ref[...] + jnp.dot(
        p.astype(mxu_dtype), rhs_ref[...].astype(mxu_dtype),
        preferred_element_type=jnp.float32)                           # [TB, 128]
    m_ref[...] = m_new

    @pl.when(n == pl.num_programs(1) - 1)
    def _finalize():
        o_ref[...] = acc_ref[...].astype(o_ref.dtype)                 # lane-dense store


def grnn_forward(x, training_data, training_targets, sigma=1.0, *,
                 tb_max=256, tn_max=512, mxu_dtype=jnp.bfloat16):
    """Pallas GRNN forward.

    x:                [B, F]
    training_data:    [N, F]
    training_targets: [N]
    returns:          [B]   (matches the PyTorch module)

    tb_max / tn_max are the per-generation tile budgets:
      v5e / v6e : raise tb_max (e.g. 512-1024) to minimize training-data
                  re-streaming from HBM (128 MiB physical VMEM).
      v7x       : keep the defaults or smaller (64 MiB VMEM/core); the parallel
                  B axis uses both TensorCores automatically.
    """
    x = jnp.asarray(x, jnp.float32)
    tx = jnp.asarray(training_data, jnp.float32)
    ty = jnp.asarray(training_targets, jnp.float32).reshape(-1)

    B, F = x.shape
    N, F2 = tx.shape
    assert F == F2, "feature dims must match"
    assert ty.shape[0] == N, "targets must match training data"

    TB = min(int(tb_max), _round_up(B, 8))
    TN = min(int(tn_max), _round_up(N, 128))
    B_pad = _round_up(B, TB)
    N_pad = _round_up(N, TN)
    F_pad = _round_up(F, 128)

    # Zero-pad features / batch / training rows.
    x_p = jnp.zeros((B_pad, F_pad), jnp.float32).at[:B, :F].set(x)
    tx_p = jnp.zeros((N_pad, F_pad), jnp.float32).at[:N, :F].set(tx)

    # ||t_j||^2 precomputed once, lane-major [1, N_pad]; padded rows get a huge
    # squared distance so their weights underflow to exactly 0.
    tt = jnp.sum(tx * tx, axis=1)
    tt_p = jnp.full((N_pad,), 1e30, jnp.float32).at[:N].set(tt).reshape(1, N_pad)

    # Targets + ones packed into one lane-aligned RHS (padded rows all-zero, so
    # they contribute nothing to numerator or denominator).
    rhs = jnp.zeros((N_pad, 128), jnp.float32)
    rhs = rhs.at[:N, 0].set(ty)
    rhs = rhs.at[:N, 1].set(1.0)

    neg_inv_two_sigma_sq = -1.0 / (2.0 * float(sigma) ** 2)

    grid = (B_pad // TB, N_pad // TN)

    # Rough VMEM footprint (double-buffered inputs/outputs + scratch + the
    # [TB, TN] weights temporary), with 2x headroom, clamped to a level that is
    # safe on all of v5e / v6e / v7x.
    est_bytes = 4 * (2 * (TB * F_pad + TN * F_pad + TN + TN * 128 + TB * 128)
                     + TB * 128 + 2 * TB + TB * TN)
    vmem_limit = int(min(64 * 1024 * 1024, max(32 * 1024 * 1024, 2 * est_bytes)))

    out = pl.pallas_call(
        functools.partial(grnn_kernel,
                          neg_inv_two_sigma_sq=neg_inv_two_sigma_sq,
                          mxu_dtype=mxu_dtype),
        out_shape=jax.ShapeDtypeStruct((B_pad, 128), jnp.float32),
        grid_spec=pltpu.PrefetchScalarGridSpec(
            num_scalar_prefetch=0,
            grid=grid,
            in_specs=[
                pl.BlockSpec((TB, F_pad), lambda i, n: (i, 0)),   # x (resident over n)
                pl.BlockSpec((TN, F_pad), lambda i, n: (n, 0)),   # training data
                pl.BlockSpec((1, TN),     lambda i, n: (0, n)),   # ||t||^2
                pl.BlockSpec((TN, 128),   lambda i, n: (n, 0)),   # [y | 1 | 0...]
            ],
            out_specs=pl.BlockSpec((TB, 128), lambda i, n: (i, 0)),
            scratch_shapes=[
                pltpu.VMEM((TB, 1), jnp.float32),    # ||x||^2
                pltpu.VMEM((TB, 1), jnp.float32),    # running max of the exponent
                pltpu.VMEM((TB, 128), jnp.float32),  # numerator/denominator accumulator
            ],
        ),
        compiler_params=pltpu.CompilerParams(
            dimension_semantics=("parallel", "arbitrary"),
            vmem_limit_bytes=vmem_limit,
        ),
    )(x_p, tx_p, tt_p, rhs)

    # Lane-dense slab: lane 0 = numerator, lane 1 = denominator. The final
    # divide over B scalars happens here in full f32 precision.
    return out[:B, 0] / out[:B, 1]


def grnn_reference(x, training_data, training_targets, sigma=1.0):
    """Pure-JAX reference matching the PyTorch forward exactly."""
    diff = x[:, None, :] - training_data[None, :, :]
    dist_sq = jnp.sum(diff ** 2, axis=2)
    weights = jnp.exp(-dist_sq / (2.0 * sigma ** 2))
    numerator = weights @ training_targets
    denominator = jnp.sum(weights, axis=1)
    return numerator / denominator


if __name__ == "__main__":
    key = jax.random.PRNGKey(0)
    k1, k2, k3 = jax.random.split(key, 3)

    B, F, N = 24, 10, 300   # batch, features, stored training samples
    sigma = 1.5

    x = jax.random.normal(k1, (B, F), dtype=jnp.float32)
    train_x = jax.random.normal(k2, (N, F), dtype=jnp.float32)
    train_y = jax.random.normal(k3, (N,), dtype=jnp.float32)

    y_ref = grnn_reference(x, train_x, train_y, sigma=sigma)

    # 1) f32 MXU operands, small tiles -> exercises the multi-step grid
    #    (3 B-tiles x 3 N-tiles), accumulator rescaling and padding logic.
    y_f32 = grnn_forward(x, train_x, train_y, sigma=sigma,
                         tb_max=8, tn_max=128, mxu_dtype=jnp.float32)
    y_f32 = jax.block_until_ready(y_f32)
    assert y_f32.shape == (B,)
    assert bool(jnp.all(jnp.isfinite(y_f32)))
    assert jnp.allclose(y_f32, y_ref, atol=2e-2, rtol=2e-2), (
        f"f32-path mismatch:\n{y_f32}\nvs\n{y_ref}")

    # 2) Default fast path: bf16 MXU operands, default tiles (single grid step
    #    at these toy sizes). Looser tolerance accounts for bf16 dot operands.
    y_bf16 = grnn_forward(x, train_x, train_y, sigma=sigma)
    y_bf16 = jax.block_until_ready(y_bf16)
    assert y_bf16.shape == (B,)
    assert bool(jnp.all(jnp.isfinite(y_bf16)))
    assert jnp.allclose(y_bf16, y_ref, atol=5e-2, rtol=5e-2), (
        f"bf16-path mismatch:\n{y_bf16}\nvs\n{y_ref}")

    print("KERNEL_OK")
</pallas_src>

<mosaic_0001>
module attributes {stable_mosaic.version = 11 : i64} {
  func.func @grnn_kernel(%arg0: i32, %arg1: i32, %arg2: memref<8x128xf32, #tpu.memory_space<vmem>>, %arg3: memref<128x128xf32, #tpu.memory_space<vmem>>, %arg4: memref<1x128xf32, #tpu.memory_space<vmem>>, %arg5: memref<128x128xf32, #tpu.memory_space<vmem>>, %arg6: memref<8x128xf32, #tpu.memory_space<vmem>>, %arg7: memref<8x1xf32, #tpu.memory_space<vmem>>, %arg8: memref<8x1xf32, #tpu.memory_space<vmem>>, %arg9: memref<8x128xf32, #tpu.memory_space<vmem>>) attributes {dimension_semantics = [#tpu.dimension_semantics<parallel>, #tpu.dimension_semantics<arbitrary>], iteration_bounds = array<i64: 3, 3>, scalar_prefetch = 0 : i64, scratch_operands = 3 : i64, tpu.core_type = #tpu.core_type<tc>, window_params = [{transform_indices = @transform_0, window_bounds = array<i64: 8, 128>}, {transform_indices = @transform_1, window_bounds = array<i64: 128, 128>}, {transform_indices = @transform_2, window_bounds = array<i64: 1, 128>}, {transform_indices = @transform_3, window_bounds = array<i64: 128, 128>}, {transform_indices = @transform_4, window_bounds = array<i64: 8, 128>}]} {
    %c0_i32 = arith.constant 0 : i32
    %0 = arith.cmpi eq, %arg1, %c0_i32 : i32
    %1 = arith.extui %0 : i1 to i32
    %c0_i32_0 = arith.constant 0 : i32
    %2 = arith.cmpi ne, %1, %c0_i32_0 : i32
    scf.if %2 {
      %c0_24 = arith.constant 0 : index
      %c0_25 = arith.constant 0 : index
      %38 = vector.load %arg2[%c0_24, %c0_25] : memref<8x128xf32, #tpu.memory_space<vmem>>, vector<8x128xf32>
      %39 = arith.mulf %38, %38 : vector<8x128xf32>
      %cst_26 = arith.constant dense<0.000000e+00> : vector<8xf32>
      %40 = vector.multi_reduction <add>, %39, %cst_26 [1] : vector<8x128xf32> to vector<8xf32>
      %41 = vector.shape_cast %40 : vector<8xf32> to vector<8x1xf32>
      %c0_27 = arith.constant 0 : index
      %c0_28 = arith.constant 0 : index
      %42 = vector.load %arg7[%c0_27, %c0_28] : memref<8x1xf32, #tpu.memory_space<vmem>>, vector<8x1xf32>
      tpu.vector_store %arg7[%c0_27, %c0_28], %41 {strides = array<i32>} : memref<8x1xf32, #tpu.memory_space<vmem>>, vector<8x1xf32>,
      %cst_29 = arith.constant 0xFF800000 : f32
      %43 = vector.broadcast %cst_29 : f32 to vector<8x1xf32>
      %c0_30 = arith.constant 0 : index
      %c0_31 = arith.constant 0 : index
      %44 = vector.load %arg8[%c0_30, %c0_31] : memref<8x1xf32, #tpu.memory_space<vmem>>, vector<8x1xf32>
      tpu.vector_store %arg8[%c0_30, %c0_31], %43 {strides = array<i32>} : memref<8x1xf32, #tpu.memory_space<vmem>>, vector<8x1xf32>,
      %cst_32 = arith.constant 0.000000e+00 : f32
      %45 = vector.broadcast %cst_32 : f32 to vector<8x128xf32>
      %c0_33 = arith.constant 0 : index
      %c0_34 = arith.constant 0 : index
      %46 = vector.load %arg9[%c0_33, %c0_34] : memref<8x128xf32, #tpu.memory_space<vmem>>, vector<8x128xf32>
      tpu.vector_store %arg9[%c0_33, %c0_34], %45 {strides = array<i32>} : memref<8x128xf32, #tpu.memory_space<vmem>>, vector<8x128xf32>,
    } else {
    }
    %c0 = arith.constant 0 : index
    %c0_1 = arith.constant 0 : index
    %3 = vector.load %arg2[%c0, %c0_1] : memref<8x128xf32, #tpu.memory_space<vmem>>, vector<8x128xf32>
    %c0_2 = arith.constant 0 : index
    %c0_3 = arith.constant 0 : index
    %4 = vector.load %arg3[%c0_2, %c0_3] : memref<128x128xf32, #tpu.memory_space<vmem>>, vector<128x128xf32>
    %cst = arith.constant dense<0.000000e+00> : vector<8x128xf32>
    %5 = tpu.matmul %3, %4, %cst {dimension_numbers = #tpu.dot_dimension_numbers<[1], [1], [0], [0], [0, 0, 1, 0], [], []>} : vector<8x128xf32>, vector<128x128xf32>, vector<8x128xf32> -> vector<8x128xf32>
    %c0_4 = arith.constant 0 : index
    %c0_5 = arith.constant 0 : index
    %6 = vector.load %arg7[%c0_4, %c0_5] : memref<8x1xf32, #tpu.memory_space<vmem>>, vector<8x1xf32>
    %c0_6 = arith.constant 0 : index
    %c0_7 = arith.constant 0 : index
    %7 = vector.load %arg4[%c0_6, %c0_7] : memref<1x128xf32, #tpu.memory_space<vmem>>, vector<1x128xf32>
    %8 = vector.broadcast %6 : vector<8x1xf32> to vector<8x128xf32>
    %9 = vector.broadcast %7 : vector<1x128xf32> to vector<8x128xf32>
    %10 = arith.addf %8, %9 : vector<8x128xf32>
    %cst_8 = arith.constant 2.000000e+00 : f32
    %11 = vector.broadcast %cst_8 : f32 to vector<8x128xf32>
    %12 = arith.mulf %11, %5 : vector<8x128xf32>
    %13 = arith.subf %10, %12 : vector<8x128xf32>
    %cst_9 = arith.constant 0.000000e+00 : f32
    %14 = vector.broadcast %cst_9 : f32 to vector<8x128xf32>
    %15 = arith.maximumf %13, %14 : vector<8x128xf32>
    %cst_10 = arith.constant -0.222222224 : f32
    %16 = vector.broadcast %cst_10 : f32 to vector<8x128xf32>
    %17 = arith.mulf %15, %16 : vector<8x128xf32>
    %c0_11 = arith.constant 0 : index
    %c0_12 = arith.constant 0 : index
    %18 = vector.load %arg8[%c0_11, %c0_12] : memref<8x1xf32, #tpu.memory_space<vmem>>, vector<8x1xf32>
    %cst_13 = arith.constant dense<0xFF800000> : vector<8xf32>
    %19 = vector.multi_reduction <maximumf>, %17, %cst_13 [1] : vector<8x128xf32> to vector<8xf32>
    %20 = vector.shape_cast %19 : vector<8xf32> to vector<8x1xf32>
    %21 = arith.maximumf %18, %20 : vector<8x1xf32>
    %22 = arith.subf %18, %21 : vector<8x1xf32>
    %23 = math.exp %22 : vector<8x1xf32>
    %24 = vector.broadcast %21 : vector<8x1xf32> to vector<8x128xf32>
    %25 = arith.subf %17, %24 : vector<8x128xf32>
    %26 = math.exp %25 : vector<8x128xf32>
    %c0_14 = arith.constant 0 : index
    %c0_15 = arith.constant 0 : index
    %27 = vector.load %arg9[%c0_14, %c0_15] : memref<8x128xf32, #tpu.memory_space<vmem>>, vector<8x128xf32>
    %28 = vector.broadcast %23 : vector<8x1xf32> to vector<8x128xf32>
    %29 = arith.mulf %28, %27 : vector<8x128xf32>
    %c0_16 = arith.constant 0 : index
    %c0_17 = arith.constant 0 : index
    %30 = vector.load %arg5[%c0_16, %c0_17] : memref<128x128xf32, #tpu.memory_space<vmem>>, vector<128x128xf32>
    %cst_18 = arith.constant dense<0.000000e+00> : vector<8x128xf32>
    %31 = tpu.matmul %26, %30, %cst_18 {dimension_numbers = #tpu.dot_dimension_numbers<[1], [0], [0], [1], [0, 0, 1, 1], [], []>} : vector<8x128xf32>, vector<128x128xf32>, vector<8x128xf32> -> vector<8x128xf32>
    %32 = arith.addf %29, %31 : vector<8x128xf32>
    %c0_19 = arith.constant 0 : index
    %c0_20 = arith.constant 0 : index
    %33 = vector.load %arg9[%c0_19, %c0_20] : memref<8x128xf32, #tpu.memory_space<vmem>>, vector<8x128xf32>
    tpu.vector_store %arg9[%c0_19, %c0_20], %32 {strides = array<i32>} : memref<8x128xf32, #tpu.memory_space<vmem>>, vector<8x128xf32>,
    %c0_21 = arith.constant 0 : index
    %c0_22 = arith.constant 0 : index
    %34 = vector.load %arg8[%c0_21, %c0_22] : memref<8x1xf32, #tpu.memory_space<vmem>>, vector<8x1xf32>
    tpu.vector_store %arg8[%c0_21, %c0_22], %21 {strides = array<i32>} : memref<8x1xf32, #tpu.memory_space<vmem>>, vector<8x1xf32>,
    %c2_i32 = arith.constant 2 : i32
    %35 = arith.cmpi eq, %arg1, %c2_i32 : i32
    %36 = arith.extui %35 : i1 to i32
    %c0_i32_23 = arith.constant 0 : i32
    %37 = arith.cmpi ne, %36, %c0_i32_23 : i32
    scf.if %37 {
      %c0_24 = arith.constant 0 : index
      %c0_25 = arith.constant 0 : index
      %38 = vector.load %arg9[%c0_24, %c0_25] : memref<8x128xf32, #tpu.memory_space<vmem>>, vector<8x128xf32>
      %c0_26 = arith.constant 0 : index
      %c0_27 = arith.constant 0 : index
      %39 = vector.load %arg6[%c0_26, %c0_27] : memref<8x128xf32, #tpu.memory_space<vmem>>, vector<8x128xf32>
      tpu.vector_store %arg6[%c0_26, %c0_27], %38 {strides = array<i32>} : memref<8x128xf32, #tpu.memory_space<vmem>>, vector<8x128xf32>,
    } else {
    }
    return
  }
  func.func @transform_0(%arg0: i32, %arg1: i32) -> (i32, i32) {
    %c0_i32 = arith.constant 0 : i32
    %c0_i32_0 = arith.constant 0 : i32
    return %arg0, %c0_i32 : i32, i32
  }
  func.func @transform_1(%arg0: i32, %arg1: i32) -> (i32, i32) {
    %c0_i32 = arith.constant 0 : i32
    %c0_i32_0 = arith.constant 0 : i32
    return %arg1, %c0_i32 : i32, i32
  }
  func.func @transform_2(%arg0: i32, %arg1: i32) -> (i32, i32) {
    %c0_i32 = arith.constant 0 : i32
    %c0_i32_0 = arith.constant 0 : i32
    return %c0_i32, %arg1 : i32, i32
  }
  func.func @transform_3(%arg0: i32, %arg1: i32) -> (i32, i32) {
    %c0_i32 = arith.constant 0 : i32
    %c0_i32_0 = arith.constant 0 : i32
    return %arg1, %c0_i32 : i32, i32
  }
  func.func @transform_4(%arg0: i32, %arg1: i32) -> (i32, i32) {
    %c0_i32 = arith.constant 0 : i32
    %c0_i32_0 = arith.constant 0 : i32
    return %arg0, %c0_i32 : i32, i32
  }
}

</mosaic_0001>

<bundles_post_ra>
// kernel: tpu_custom_call.1
= control target key start
LH: loop header
LB: loop body
LE: loop exit
PB: predicated region body
PF: predicated region fallthrough
CT: control target
= control target key end

     0   :  { %s1680_s0 = inlined_call_operand.hbm [shape: f32[24,128], index: 0, kind: input, shape index: {}]   ;;  %s1681_s1 = inlined_call_operand.hbm [shape: f32[384,128], index: 1, kind: input, shape index: {}]   ;;  %s1682_s2 = inlined_call_operand.vmem [shape: f32[1,384], index: 2, kind: input, shape index: {}]   ;;  %s1683_s3 = inlined_call_operand.hbm [shape: f32[384,128], index: 3, kind: input, shape index: {}]   ;;  %s1684_s4 = inlined_call_operand.hbm [shape: f32[24,128], index: 4, kind: output, shape index: {}]  }
   0x1   :  { %1700 = sst [smem:[#allocation22_spill]] %s1681_s1 }
   0x2   :  { %1701 = sst [smem:[#allocation23_spill]] %s1684_s4 }
   0x3   :  { %9 = vsyncpa [#allocation6], 0 }
   0x4   :  { %11 = vsyncpa [#allocation6 + $0x1], 0 }
   0x5   :  { %12 = vsyncpa [#allocation9], 0 }
   0x6   :  { %14 = vsyncpa [#allocation9 + $0x1], 0 }
   0x7   :  { %15 = vsyncpa [#allocation7], 0 }
   0x8   :  { %17 = vsyncpa [#allocation7 + $0x1], 0  ;;  %s1259_s15 = smov 0   ;;  %s1261_s16 = smov 0  }
   0x9   :  { %s1263_s17 = smov 0   ;;  %s1265_s18 = smov 0  }
   0xa   :  { %s1267_s19 = smov 0   ;;  %s1269_s20 = smov 0  }
   0xb   :  { %s1271_s21 = smov 0   ;;  %s1273_s22 = smov 0  }
   0xc   :  { %s1275_s23 = smov 0   ;;  %s1277_s24 = smov 0  }
   0xd   :  { %s1279_s25 = smov 0  }
   0xe LB: > { %1702 = sst [smem:[#allocation15_spill]] %s1188_s17  ;;  %s32_s26 = sadd.s32 1, %s1212_s23  ;;  %s1220_s25 = sphi %s1279_s25, %s23_s25   ;;  %s1216_s24 = sphi %s1277_s24, %s1739_s24   ;;  %s1212_s23 = sphi %s1275_s23, %s1746_s23   ;;  %s1208_s22 = sphi %s1273_s22, %s1737_s22   ;;  %s1204_s21 = sphi %s1271_s21, %s1736_s21   ;;  %s1200_s20 = sphi %s1269_s20, %s1745_s20   ;;  %s1196_s19 = sphi %s1267_s19, %s1744_s19   ;;  %s1192_s18 = sphi %s1265_s18, %s1743_s18   ;;  %s1188_s17 = sphi %s1263_s17, %s1742_s17   ;;  %s1184_s16 = sphi %s1261_s16, %s1741_s16   ;;  %s1180_s15 = sphi %s1259_s15, %s1740_s15  }
   0xf   : > { %1703 = sst [smem:[#allocation16_spill]] %s1208_s22  ;;  %p1687_p0 = scmp.eq.s32.totalorder %s1220_s25, 0 }
  0x10   : > { %1704 = sst [smem:[#allocation17_spill]] %s1212_s23  ;;  %p1316_p1 = scmp.ge.s32.totalorder %s32_s26, 3 }
  0x11   : > { %1705 = sst [smem:[#allocation18_spill]] %s1216_s24  ;;  %s68_s28 = sadd.s32 1, %s1188_s17 }
  0x12   : > { %p75_p2 = scmp.ne.s32.totalorder %s1188_s17, %s1184_s16  ;;  %s1748_s26 = smov (%p1316_p1, %s32_s26), 0 }
  0x13   : > { %1707 = sst [smem:[#allocation19_spill]] %s1748_s26  ;;  %s65_s29 = ssub.s32 %s1212_s23, %s1748_s26 }
  0x14   : > { %p77_p3 = por %p75_p2, %p1687_p0  ;;  %p1686_p4 = scmp.lt.s32.totalorder %s1220_s25, 9 }
  0x15   : > { %p66_p5 = scmp.eq.s32.totalorder %s65_s29, 0  ;;  %s201_s30 = sand.u32 1, %s1220_s25  }
  0x16   : > { %s203_s5 = sand.u32 1, %s1188_s17   ;;  %s1685_s8 = sshll.u32 %s1212_s23, 11 }
  0x17   : > { %s1335_s6 = scalar_select %p66_p5, %s1188_s17, %s68_s28  }
  0x18   : > { %s1337_s7 = sshll.u32 %s203_s5, 7  ;;  %s1709_s1 = sld [smem:[#allocation22_spill]] }
  0x19   : > { %1708 = sst [smem:[#allocation20_spill]] %s1335_s6  ;;  %s205_s12 = scalar_lea.vmem [#allocation8], %s1337_s7 }
  0x1a   : > { %s212_s13 = sshll.u32 %s205_s12, 4  ;;  %p1350_p6 = pnand %p1686_p4, %p77_p3  ;;  %s1354_s13 = int_to_ptr.vmem [resolvable:$true] %s212_s13 }
  0x1b   : > { %s1356_s28 = scalar_lea.sflag [#allocation9], %s201_s30 }
  0x1c   : > { %p1689_p8 = pneg %p1350_p6 }
  0x1e   : > { %s1345_s11 = scalar_lea.hbm %s1709_s1, %s1685_s8  ;;  %s1009_s10 = scalar_lea.hbm %s1709_s1, 6144 }
  0x1f   : > { %s1004_s29 = scalar_lea.hbm %s1345_s11, 2048  ;;  %p1010_p11 = scmp.lt.u32.totalorder %s1345_s11, %s1709_s1 }
  0x20   : > { %p1005_p7 = scmp.ne.s32.totalorder %s1345_s11, %s1004_s29  ;;  %p1011_p12 = scmp.lt.u32.totalorder %s1009_s10, %s1004_s29 }
  0x21   : > { %p1013_p2 = scmp.lt.u32.totalorder %s1004_s29, %s1345_s11 }
  0x22   : > { %p1007_p9 = pnand %p1689_p8, %p1005_p7  ;;  %p1012_p13 = por %p1011_p12, %p1010_p11 }
  0x24   : > { %p1008_p10 = pneg %p1007_p9  ;;  %p1014_p3 = por %p1013_p2, %p1012_p13 }
  0x26   : > { %p1015_p5 = pnand %p1014_p3, %p1008_p10 }
  0x28   : > { %1018 = shalt.err (!%p1015_p5)
}
  0x29   : > { %s1019_s30 = scalar_lea.vmem %s1354_s13, 2048  ;;  %s1222_s5 = smov [#allocation8]  }
  0x2a   : > { %p1020_p7 = scmp.ne.s32.totalorder %s1354_s13, %s1019_s30  ;;  %s1024_s9 = sshll.u32 %s1222_s5, 4  ;;  %s1025_s9 = int_to_ptr.vmem [resolvable:$false] %s1024_s9 }
  0x2b   : > { %s1026_s8 = scalar_lea.vmem %s1025_s9, 4096  ;;  %p1027_p0 = scmp.lt.s32.totalorder %s1354_s13, %s1025_s9 }
  0x2c   : > { %p1022_p9 = pnand %p1020_p7, %p1689_p8  ;;  %p1028_p11 = scmp.lt.s32.totalorder %s1026_s8, %s1019_s30 }
  0x2e   : > { %p1023_p4 = pneg %p1022_p9  ;;  %p1029_p12 = por %p1028_p11, %p1027_p0 }
  0x30   : > { %p1030_p13 = pnand %p1029_p12, %p1023_p4 }
  0x32   : > { %1033 = shalt.err (!%p1030_p13)
}
  0x33   : > { %s1690_s29 = smov 128   ;;  %s1691_s10 = smov 8  }
  0x34   : > { %892 = dma.hbm_to_vmem [thread:$0]  (!%p1350_p6), %s1345_s11, 2048, %s1354_s13, %s1356_s28, %s1690_s29, %s1690_s29, %s1691_s10  }
  0x35   : > { %p81_p0 = scmp.ne.s32.totalorder %s1184_s16, %s1180_s15  ;;  %s1711_s12 = sshll.u32 %s1212_s23, 11 }
  0x36   : > { %s1394_s9 = scalar_lea.hbm %s1683_s3, %s1711_s12  ;;  %p712_p4 = scmp.ge.s32.totalorder %s1220_s25, 1 }
  0x37   : > { %s232_s8 = scalar_lea.vmem [#allocation10], %s1337_s7  ;;  %p247_p10 = scmp.lt.s32.totalorder %s1220_s25, 10 }
  0x38   : > { %s239_s1 = sshll.u32 %s232_s8, 4  ;;  %s1404_s11 = sadd.s32 4294967295, %s1220_s25   ;;  %s1471_s1 = int_to_ptr.vmem [resolvable:$true] %s239_s1 }
  0x39   : > { %p1399_p2 = pnand %p712_p4, %p247_p10  ;;  %s701_s13 = sadd.s32 4294967294, %s1220_s25  }
  0x3a   : > { %s35_s12 = sadd.s32 1, %s1216_s24  ;;  %s42_s7 = sadd.s32 1, %s1200_s20 }
  0x3b   : > { %s1712_s26 = scalar_select %p1399_p2, 1, 0 }
  0x3c   : > { %s1750_s12 = smov (!%p1316_p1, %s35_s12), %s1216_s24  ;;  %p49_p3 = scmp.ne.s32.totalorder %s1200_s20, %s1196_s19 }
  0x3d   : > { %p37_p5 = scmp.ge.s32.totalorder %s1750_s12, 3  ;;  %p55_p7 = scmp.ne.s32.totalorder %s1196_s19, %s1192_s18 }
  0x3e   : > { %p1713_p9 = scmp.eq.s32.totalorder %s1220_s25, 0  ;;  %p56_p12 = scmp.eq.s32.totalorder %s1404_s11, 0 }
  0x3f   : > { %s1752_s12 = smov (%p37_p5, %s1750_s12), 0  ;;  %p157_p4 = scmp.eq.s32.totalorder %s1404_s11, 8 }
  0x40   : > { %p1418_p11 = por %p1713_p9, %p49_p3  ;;  %1715 = sst [smem:[#allocation21_spill]] %s1752_s12 }
  0x41   : > { %p1428_p1 = por %p56_p12, %p55_p7  ;;  %p1435_p13 = por %p81_p0, %p56_p12 }
  0x42   : > { %s39_s8 = ssub.s32 %s1216_s24, %s1752_s12  ;;  %p163_p9 = scmp.eq.s32.totalorder %s701_s13, 8 }
  0x43   : > { %s1716_s27 = scalar_select %p1428_p1, 1, 0 }
  0x44   : > { %s1717_s5 = scalar_select %p1435_p13, 1, 0 }
  0x45   : > { %p40_p10 = scmp.eq.s32.totalorder %s39_s8, 0  ;;  %p1442_p8 = por %p157_p4, %p49_p3 }
  0x46   : > { %s183_s10 = sand.u32 1, %s1200_s20   ;;  %p1453_p5 = por %p163_p9, %p55_p7 }
  0x47   : > { %s1718_s29 = scalar_select %p1442_p8, 1, 0 }
  0x48   : > { %s1448_s23 = scalar_select %p40_p10, %s1200_s20, %s42_s7  }
  0x49   : > { %s1719_s6 = scalar_select %p1453_p5, 1, 0 }
  0x4a   : > { %s704_s15 = sshll.u32 %s183_s10, 3  ;;  %s705_s17 = sshll.u32 %s1216_s24, 7 }
  0x4b   : > { %s1461_s12 = scalar_lea.hbm %s1680_s0, %s705_s17  ;;  %s187_s13 = scalar_lea.vmem [#allocation5], %s704_s15 }
  0x4c   : > { %s194_s8 = sshll.u32 %s187_s13, 4  ;;  %p1720_p0 = scmp.lt.s32.totalorder %s1220_s25, 9  ;;  %s1473_s8 = int_to_ptr.vmem [resolvable:$true] %s194_s8 }
  0x4d   : > { %s184_s4 = scalar_lea.sflag [#allocation6], %s183_s10  ;;  %s1034_s17 = scalar_lea.hbm %s1461_s12, 128 }
  0x4e   : > { %p1467_p3 = pnand %p1720_p0, %p1418_p11  ;;  %p1035_p7 = scmp.ne.s32.totalorder %s1461_s12, %s1034_s17 }
  0x4f   : > { %s1039_s15 = scalar_lea.hbm %s1680_s0, 384  ;;  %p1040_p11 = scmp.lt.u32.totalorder %s1461_s12, %s1680_s0 }
  0x50   : > { %p1036_p12 = pneg %p1467_p3  ;;  %p1041_p9 = scmp.lt.u32.totalorder %s1039_s15, %s1034_s17 }
  0x51   : > { %p1043_p5 = scmp.lt.u32.totalorder %s1034_s17, %s1461_s12 }
  0x52   : > { %p1037_p4 = pnand %p1036_p12, %p1035_p7  ;;  %p1042_p0 = por %p1041_p9, %p1040_p11 }
  0x54   : > { %p1038_p10 = pneg %p1037_p4  ;;  %p1044_p8 = por %p1043_p5, %p1042_p0 }
  0x56   : > { %p1045_p13 = pnand %p1044_p8, %p1038_p10 }
  0x58   : > { %1048 = shalt.err (!%p1045_p13)
}
  0x59   : > { %s1049_s10 = scalar_lea.vmem %s1473_s8, 128  ;;  %s1225_s22 = smov [#allocation5]  }
  0x5a   : > { %p1050_p7 = scmp.ne.s32.totalorder %s1473_s8, %s1049_s10  ;;  %s1054_s30 = sshll.u32 %s1225_s22, 4  ;;  %s1055_s30 = int_to_ptr.vmem [resolvable:$false] %s1054_s30 }
  0x5b   : > { %s1056_s24 = scalar_lea.vmem %s1055_s30, 256  ;;  %p1057_p2 = scmp.lt.s32.totalorder %s1473_s8, %s1055_s30 }
  0x5c   : > { %p1052_p4 = pnand %p1050_p7, %p1036_p12  ;;  %p1058_p11 = scmp.lt.s32.totalorder %s1056_s24, %s1049_s10 }
  0x5e   : > { %p1053_p1 = pneg %p1052_p4  ;;  %p1059_p9 = por %p1058_p11, %p1057_p2 }
  0x60   : > { %p1060_p5 = pnand %p1059_p9, %p1053_p1 }
  0x62   : > { %1063 = shalt.err (!%p1060_p5)
}
  0x63   : > { %889 = dma.hbm_to_vmem [thread:$0]  (!%p1467_p3), %s1461_s12, 128, %s1473_s8, %s184_s4  }
  0x64   : > { %s1064_s17 = scalar_lea.hbm %s1394_s9, 2048  ;;  %p1722_p13 = pneg %p1350_p6 }
  0x65   : > { %p1065_p8 = scmp.ne.s32.totalorder %s1394_s9, %s1064_s17  ;;  %s1069_s10 = scalar_lea.hbm %s1683_s3, 6144 }
  0x66   : > { %p1070_p2 = scmp.lt.u32.totalorder %s1394_s9, %s1683_s3  ;;  %p1071_p1 = scmp.lt.u32.totalorder %s1069_s10, %s1064_s17 }
  0x67   : > { %p1067_p12 = pnand %p1065_p8, %p1722_p13  ;;  %p1073_p7 = scmp.lt.u32.totalorder %s1064_s17, %s1394_s9 }
  0x68   : > { %p1072_p0 = por %p1071_p1, %p1070_p2 }
  0x69   : > { %p1068_p10 = pneg %p1067_p12 }
  0x6a   : > { %p1074_p4 = por %p1073_p7, %p1072_p0 }
  0x6c   : > { %p1075_p11 = pnand %p1074_p4, %p1068_p10 }
  0x6e   : > { %1078 = shalt.err (!%p1075_p11)
}
  0x6f   : > { %s1079_s12 = scalar_lea.vmem %s1471_s1, 2048  ;;  %p1723_p9 = pmov %p1722_p13 }
  0x70   : > { %p1080_p3 = scmp.ne.s32.totalorder %s1471_s1, %s1079_s12  ;;  %s1226_s8 = smov [#allocation10]  }
  0x71   : > { %s1084_s4 = sshll.u32 %s1226_s8, 4  ;;  %s1085_s4 = int_to_ptr.vmem [resolvable:$false] %s1084_s4 }
  0x72   : > { %p1082_p5 = pnand %p1080_p3, %p1723_p9  ;;  %s1086_s30 = scalar_lea.vmem %s1085_s4, 4096 }
  0x73   : > { %p1087_p13 = scmp.lt.s32.totalorder %s1471_s1, %s1085_s4  ;;  %p1088_p12 = scmp.lt.s32.totalorder %s1086_s30, %s1079_s12 }
  0x74   : > { %p1083_p8 = pneg %p1082_p5 }
  0x75   : > { %p1089_p2 = por %p1088_p12, %p1087_p13 }
  0x77   : > { %p1090_p1 = pnand %p1089_p2, %p1083_p8 }
  0x79   : > { %1093 = shalt.err (!%p1090_p1)
}
  0x7a   : > { %s1724_s24 = smov 8   ;;  %s1725_s17 = smov 128  }
  0x7b   : > { %895 = dma.hbm_to_vmem [thread:$0]  (!%p1350_p6), %s1394_s9, 2048, %s1471_s1, %s1356_s28, %s1725_s17, %s1725_s17, %s1724_s24  }
  0x7c   : > { %p1726_p10 = scmp.ne.s32.totalorder %s1712_s26, 0 }
  0x7d   : > { %s1530_s15 = sand.u32 (!%p1726_p10), 1, %s1196_s19   ;;  %p1727_p0 = scmp.ne.s32.totalorder (!%p1726_p10), %s1716_s27, 0 }
  0x7e   : > { %251 = sbr.rel (%p1726_p10) target bundleno = 1111 (0x457), region = 36  ;;  %s713_s13 = sshll.u32 (!%p1726_p10), %s1530_s15, 3 }
  0x7f   : > { %s254_s10 = scalar_lea.sflag (!%p1726_p10), [#allocation6], %s1530_s15  ;;  %s1534_s22 = scalar_lea.vmem (!%p1726_p10), [#allocation5], %s713_s13 }
  0x85   : > { %1167 = dma.done.wait (%p1727_p0), %s254_s10, 128  }
  0x86   : > { %1169 = vsyncadd (%p1727_p0), %s254_s10, 4294967168  ;;  %s262_s1 = sand.u32 1, %s1404_s11   ;;  %s264_s26 = sand.u32 1, %s1184_s16  }
  0x87   : > { %s714_s14 = sshll.u32 %s264_s26, 7  ;;  %s263_s28 = scalar_lea.sflag [#allocation9], %s262_s1 }
  0x88   : > { %s1542_s9 = scalar_lea.vmem [#allocation8], %s714_s14  ;;  %p1728_p6 = scmp.ne.s32.totalorder %s1717_s5, 0 }
  0x8a   : > { %1171 = dma.done.wait (%p1728_p6), %s263_s28, 4096  }
  0x8b   : > { %1173 = vsyncadd (%p1728_p6), %s263_s28, 4294963200  ;;  %p314_p7 = scmp.lt.s32.totalorder %s1204_s21, 2  ;;  %s1556_s8 = scalar_lea.vmem [#allocation10], %s714_s14 }
  0x8c   : > { %s1558_s4 = scalar_lea.vmem [#allocation11], %s713_s13  ;;  %p717_p4 = scmp.ne.s32.totalorder %s1204_s21, 0 }
  0x8d   : > { %s1550_s7 = scalar_select %p314_p7, %s1204_s21, 2 }
  0x8e   : > { %321 = sbr.rel (%p717_p4) target bundleno = 288 (0x120), region = 52  ;;  %v322_v0 = vld [vmem:[%s1534_s22] sm:$0xff] (!%p717_p4)  ;;  %vm326_vm0 = vcmask (!%p717_p4), 7168   ;;  %v1227_v2 = vmov (!%p717_p4), -inf   ;;  %v1228_v3 = vmov (!%p717_p4), 0.0  }
  0x8f   : > { %s316_s11 = scalar_lea.vmem %s1682_s2, %s1550_s7  ;;  %v323_v1 = vmul.f32 (!%p717_p4), %v322_v0, %v322_v0  ;;  %328 = vst.msk [vmem:[#allocation3] sm:$0xff] (!%p717_p4), %vm326_vm0, %v1227_v2  ;;  %329 = vst [vmem:[#allocation4] sm:$0xff] (!%p717_p4), %v1228_v3 }
  0x91   : > { %324 = vadd.xlane.f32.xlu0 (!%p717_p4), %v323_v1 }
 0x11e   : > { %v325_v4 = vpop.xlane.xlu0 %324 }
 0x11f   : > { %327 = vst.msk [vmem:[#allocation2] sm:$0xff] %vm326_vm0, %v325_v4 }
 0x120 PF: > { %v331_v5 = vld [vmem:[%s1542_s9] sm:$0xff]  ;;  %v332_v6 = vld [vmem:[%s1542_s9 + $0x8] sm:$0xff]  ;;  %v1229_v7 = vmov 0.0|0.0   ;;  %vm1230_vm1 = vmmov 0   ;;  %v1231_v9 = vmov 0.0   ;;  %v1232_v10 = vmov 0  }
 0x121   : > { %830 = vmatprep.subr.bf16.mxu0 %v1229_v7  ;;  %v831_v8 = vpack.c.bf16 %v332_v6, %v331_v5  ;;  %792 = vmatprep.mubr.msk.f32.mxu0 %vm1230_vm1, %v1231_v9  ;;  %v333_v11 = vld [vmem:[%s1542_s9 + $0x10] sm:$0xff]  ;;  %v334_v12 = vld [vmem:[%s1542_s9 + $0x18] sm:$0xff]  ;;  %v335_v15 = vld [vmem:[%s1542_s9 + $0x20] sm:$0xff]  ;;  %vm545_vm2 = vcmask 7168   ;;  %p719_p11 = scmp.ne.s32.totalorder %s1204_s21, 2 }
 0x122   : > { %998 = vset.pattern.permute.xlu0 %v1232_v10  ;;  %999 = vset.pattern.permute.xlu1 %v1232_v10  ;;  %v834_v14 = vpack.c.bf16 %v334_v12, %v333_v11  ;;  %v336_v16 = vld [vmem:[%s1542_s9 + $0x28] sm:$0xff]  ;;  %v337_v18 = vld [vmem:[%s1542_s9 + $0x30] sm:$0xff]  ;;  %v338_v19 = vld [vmem:[%s1542_s9 + $0x38] sm:$0xff] }
 0x123   : > { %832 = vmatpush3.bf16.xpose.msra.mxu0 %v831_v8  ;;  %854 = vmatprep.subr.bf16.mxu1 %v1229_v7  ;;  %v837_v17 = vpack.c.bf16 %v336_v16, %v335_v15  ;;  %v840_v20 = vpack.c.bf16 %v338_v19, %v337_v18  ;;  %v339_v21 = vld [vmem:[%s1542_s9 + $0x40] sm:$0xff]  ;;  %v340_v22 = vld [vmem:[%s1542_s9 + $0x48] sm:$0xff]  ;;  %v341_v24 = vld [vmem:[%s1542_s9 + $0x50] sm:$0xff] }
 0x124   : > { %833 = vmatprep.subr.bf16.mxu0 %v1229_v7  ;;  %827 = vmatprep.mubr.msk.f32.mxu1 %vm1230_vm1, %v1231_v9  ;;  %v843_v23 = vpack.c.bf16 %v340_v22, %v339_v21  ;;  %v342_v25 = vld [vmem:[%s1542_s9 + $0x58] sm:$0xff]  ;;  %v343_v27 = vld [vmem:[%s1542_s9 + $0x60] sm:$0xff]  ;;  %v344_v28 = vld [vmem:[%s1542_s9 + $0x68] sm:$0xff] }
 0x125   : > { %v846_v26 = vpack.c.bf16 %v342_v25, %v341_v24  ;;  %v849_v29 = vpack.c.bf16 %v344_v28, %v343_v27  ;;  %v345_v30 = vld [vmem:[%s1542_s9 + $0x70] sm:$0xff]  ;;  %v346_v31 = vld [vmem:[%s1542_s9 + $0x78] sm:$0xff]  ;;  %v457_v43 = vld [vmem:[%s1556_s8] sm:$0xff] }
 0x126   : > { %v417_v13 = vld [vmem:[#allocation2] sm:$0xff]  ;;  %v852_v32 = vpack.c.bf16 %v346_v31, %v345_v30  ;;  %v458_v44 = vld [vmem:[%s1556_s8 + $0x8] sm:$0xff]  ;;  %v459_v45 = vld [vmem:[%s1556_s8 + $0x10] sm:$0xff] }
 0x127   : > { %421 = vperm.xlu0 %998, %v417_v13   ;;  %v330_v33 = vld [vmem:[%s1534_s22] sm:$0xff]  ;;  %v855_v46 = vpack.c.bf16 %v458_v44, %v457_v43  ;;  %v461_v49 = vld [vmem:[%s1556_s8 + $0x20] sm:$0xff]  ;;  %v462_v50 = vld [vmem:[%s1556_s8 + $0x28] sm:$0xff] }
 0x128   : > { %v718_v34 = vld [vmem:[%s316_s11] ss:$0 sm:$0xff]  ;;  %v861_v51 = vpack.c.bf16 %v462_v50, %v461_v49  ;;  %v463_v52 = vld [vmem:[%s1556_s8 + $0x30] sm:$0xff]  ;;  %v435_v55 = vld [vmem:[#allocation3] sm:$0xff] }
 0x129   : > { %v460_v47 = vld [vmem:[%s1556_s8 + $0x18] sm:$0xff]  ;;  %856 = vmatpush3.bf16.msra.mxu1 %v855_v46  ;;  %v465_v57 = vld [vmem:[%s1556_s8 + $0x40] sm:$0xff]  ;;  %v466_v58 = vld [vmem:[%s1556_s8 + $0x48] sm:$0xff] }
 0x12a   : > { %v858_v48 = vpack.c.bf16 %v460_v47, %v459_v45  ;;  %857 = vmatprep.subr.bf16.mxu1 %v1229_v7  ;;  %v464_v53 = vld [vmem:[%s1556_s8 + $0x38] sm:$0xff]  ;;  %v867_v60 = vpack.c.bf16 %v466_v58, %v465_v57  ;;  %v467_v62 = vld [vmem:[%s1556_s8 + $0x50] sm:$0xff]  ;;  %v469_v2 = vld [vmem:[%s1556_s8 + $0x60] sm:$0xff] }
 0x12b   : > { %835 = vmatpush3.bf16.xpose.msra.mxu0 %v834_v14  ;;  %v864_v54 = vpack.c.bf16 %v464_v53, %v463_v52  ;;  %v468_v63 = vld [vmem:[%s1556_s8 + $0x58] sm:$0xff]  ;;  %v470_v3 = vld [vmem:[%s1556_s8 + $0x68] sm:$0xff]  ;;  %v471_v5 = vld [vmem:[%s1556_s8 + $0x70] sm:$0xff] }
 0x12c   : > { %836 = vmatprep.subr.bf16.mxu0 %v1229_v7  ;;  %v870_v1 = vpack.c.bf16 %v468_v63, %v467_v62  ;;  %v873_v4 = vpack.c.bf16 %v470_v3, %v469_v2  ;;  %v472_v6 = vld [vmem:[%s1556_s8 + $0x78] sm:$0xff]  ;;  %v450_v14 = vld [vmem:[#allocation4] sm:$0xff] }
 0x12d   : > { %859 = vmatpush3.bf16.msra.mxu1 %v858_v48  ;;  %v876_v8 = vpack.c.bf16 %v472_v6, %v471_v5 }
 0x12e   : > { %860 = vmatprep.subr.bf16.mxu1 %v1229_v7 }
 0x131   : > { %862 = vmatpush3.bf16.msra.mxu1 %v861_v51 }
 0x132   : > { %863 = vmatprep.subr.bf16.mxu1 %v1229_v7 }
 0x133   : > { %838 = vmatpush3.bf16.xpose.msra.mxu0 %v837_v17 }
 0x134   : > { %839 = vmatprep.subr.bf16.mxu0 %v1229_v7 }
 0x135   : > { %865 = vmatpush3.bf16.msra.mxu1 %v864_v54 }
 0x136   : > { %866 = vmatprep.subr.bf16.mxu1 %v1229_v7 }
 0x139   : > { %868 = vmatpush3.bf16.msra.mxu1 %v867_v60 }
 0x13a   : > { %869 = vmatprep.subr.bf16.mxu1 %v1229_v7 }
 0x13b   : > { %841 = vmatpush3.bf16.xpose.msra.mxu0 %v840_v20 }
 0x13c   : > { %842 = vmatprep.subr.bf16.mxu0 %v1229_v7 }
 0x13d   : > { %871 = vmatpush3.bf16.msra.mxu1 %v870_v1 }
 0x13e   : > { %872 = vmatprep.subr.bf16.mxu1 %v1229_v7 }
 0x141   : > { %874 = vmatpush3.bf16.msra.mxu1 %v873_v4 }
 0x142   : > { %875 = vmatprep.subr.bf16.mxu1 %v1229_v7 }
 0x143   : > { %844 = vmatpush3.bf16.xpose.msra.mxu0 %v843_v23 }
 0x144   : > { %845 = vmatprep.subr.bf16.mxu0 %v1229_v7 }
 0x145   : > { %877 = vmatpush3.bf16.msra.mxu1 %v876_v8 }
 0x14b   : > { %847 = vmatpush3.bf16.xpose.msra.mxu0 %v846_v26 }
 0x14c   : > { %848 = vmatprep.subr.bf16.mxu0 %v1229_v7 }
 0x153   : > { %850 = vmatpush3.bf16.xpose.msra.mxu0 %v849_v29 }
 0x154   : > { %851 = vmatprep.subr.bf16.mxu0 %v1229_v7 }
 0x15b   : > { %853 = vmatpush3.bf16.xpose.msra.mxu0 %v852_v32 }
 0x162   : > { %793 = vmatmul.mubr.f32.vlgmr.msra.gmra.mrb[0].mxu0 %v330_v33 }
 0x1a6   : > { %v422_v35 = vpop.permute.xlu0 %421 }
 0x1a7   : > { %v430_v36 = vadd.f32 %v718_v34, %v422_v35 }
 0x235   : > { %v413_v37 = vpop.f32.mrb[0].mxu0 }
 0x236   : > { %v431_v38 = vmul.f32 2.0, %v413_v37  ;;  %v794_v39 = vpop.f32.mrb[1].mxu0 }
 0x238   : > { %v432_v40 = vsub.f32 %v430_v36, %v431_v38 }
 0x23a   : > { %v433_v41 = vmax.f32 %v432_v40, 0.0 }
 0x23c   : > { %v434_v42 = vmul.f32 -0.22222222, %v433_v41 }
 0x23e   : > { %436 = vmax.xlane.f32.xlu0 %v434_v42 }
 0x2cb   : > { %v437_v56 = vpop.xlane.xlu0 %436 }
 0x2cc   : > { %v438_v59 = vmax.f32 %v435_v55, %v437_v56 }
 0x2ce   : > { %v439_v61 = vsub.f32 %v435_v55, %v438_v59  ;;  %546 = vst.msk [vmem:[#allocation3] sm:$0xff] %vm545_vm2, %v438_v59  ;;  %444 = vperm.xlu1 %999, %v438_v59  }
 0x2d0   : > { %v440_v0 = vmul.f32 1.442695, %v439_v61 }
 0x2d2   : > { %1000 = vpow2.f32 %v440_v0 }
 0x2dc   : > { %v1001_v9 = vpop.eup %1000 }
 0x2dd   : > { %453 = vperm.xlu1 %999, %v1001_v9  }
 0x34d   : > { %v445_v10 = vpop.permute.xlu1 %444 }
 0x34e   : > { %v447_v11 = vsub.f32 %v434_v42, %v445_v10 }
 0x350   : > { %v448_v12 = vmul.f32 1.442695, %v447_v11 }
 0x352   : > { %1002 = vpow2.f32 %v448_v12 }
 0x35c   : > { %v1003_v13 = vpop.eup %1002  ;;  %v454_v15 = vpop.permute.xlu1 %453 }
 0x35d   : > { %828 = vmatmul.mubr.f32.vlgmr.msra.gmra.mrb[0].mxu1 %v1003_v13  ;;  %v456_v16 = vmul.f32 %v454_v15, %v450_v14 }
 0x42d   : > { %550 = sbr.rel (%p719_p11) target bundleno = 1084 (0x43c), region = 56 }
 0x430   : > { %v539_v17 = vpop.f32.mrb[0].mxu1 }
 0x431   : > { %v543_v18 = vadd.f32 %v539_v17, %v456_v16  ;;  %v829_v19 = vpop.f32.mrb[1].mxu1 }
 0x433   : > { %544 = vst [vmem:[#allocation4] sm:$0xff] %v543_v18 }
 0x43a   : > { %v551_v7 = vld [vmem:[#allocation4] sm:$0xff] }
 0x43b   : > { %552 = vst [vmem:[%s1558_s4] sm:$0xff] %v551_v7 }
 0x43c PF: > { %s1729_s24 = sld [smem:[#allocation16_spill]]  ;;  %s1730_s22 = sld [smem:[#allocation23_spill]] }
 0x43d   : > { %s567_s14 = sshll.u32 %s1558_s4, 4  ;;  %s554_s28 = scalar_lea.sflag [#allocation7], %s1530_s15  ;;  %s568_s14 = int_to_ptr.vmem [resolvable:$true] %s567_s14 }
 0x43e   : > { %s1094_s9 = scalar_lea.vmem %s568_s14, 128  ;;  %p1732_p9 = scmp.ne.s32.totalorder %s1718_s29, 0 }
 0x43f   : > { %p1095_p3 = scmp.ne.s32.totalorder %s568_s14, %s1094_s9  ;;  %s1233_s21 = smov [#allocation11]  }
 0x440   : > { %s1098_s7 = sshll.u32 %s1233_s21, 4  ;;  %s1099_s7 = int_to_ptr.vmem [resolvable:$false] %s1098_s7 }
 0x441   : > { %p1096_p5 = pnand %p1095_p3, %p1732_p9  ;;  %s1100_s27 = scalar_lea.vmem %s1099_s7, 256 }
 0x442   : > { %s721_s17 = sshll.u32 %s1729_s24, 7  ;;  %s1731_s1 = smov %s1730_s22 }
 0x443   : > { %s1622_s26 = scalar_lea.hbm %s1730_s22, %s721_s17  ;;  %p1097_p8 = pneg %p1096_p5 }
 0x444   : > { %p1101_p13 = scmp.lt.s32.totalorder %s568_s14, %s1099_s7  ;;  %p1102_p12 = scmp.lt.s32.totalorder %s1100_s27, %s1094_s9 }
 0x446   : > { %p1103_p2 = por %p1102_p12, %p1101_p13 }
 0x448   : > { %p1104_p1 = pnand %p1103_p2, %p1097_p8 }
 0x44a   : > { %1107 = shalt.err (!%p1104_p1)
}
 0x44b   : > { %s1108_s15 = scalar_lea.hbm %s1622_s26, 128  ;;  %s1112_s8 = scalar_lea.hbm %s1731_s1, 384 }
 0x44c   : > { %p1109_p10 = scmp.ne.s32.totalorder %s1622_s26, %s1108_s15  ;;  %p1113_p7 = scmp.lt.u32.totalorder %s1622_s26, %s1731_s1 }
 0x44d   : > { %p1114_p4 = scmp.lt.u32.totalorder %s1112_s8, %s1108_s15  ;;  %p1116_p3 = scmp.lt.u32.totalorder %s1108_s15, %s1622_s26 }
 0x44e   : > { %p1110_p0 = pnand %p1109_p10, %p1732_p9 }
 0x44f   : > { %p1115_p11 = por %p1114_p4, %p1113_p7 }
 0x450   : > { %p1111_p6 = pneg %p1110_p0 }
 0x451   : > { %p1117_p5 = por %p1116_p3, %p1115_p11 }
 0x453   : > { %p1118_p8 = pnand %p1117_p5, %p1111_p6 }
 0x455   : > { %1121 = shalt.err (!%p1118_p8)
}
 0x456   : > { %884 = dma.vmem_to_hbm [thread:$0]  (%p1732_p9), %s568_s14, 128, %s1622_s26, %s554_s28  }
 0x457 PF: > { %p901_p13 = scmp.ge.s32.totalorder %s1220_s25, 2  ;;  %s579_s30 = sand.u32 1, %s1192_s18  }
 0x458   : > { %p1733_p12 = scmp.ne.s32.totalorder %s1719_s6, 0  ;;  %s580_s24 = scalar_lea.sflag [#allocation7], %s579_s30 }
 0x45a   : > { %p897_p2 = pnand %p901_p13, %p1733_p12 }
 0x45c   : > { %1175 = dma.done.wait (!%p897_p2), %s580_s24, 128  }
 0x45d   : > { %1177 = vsyncadd (!%p897_p2), %s580_s24, 4294967168  ;;  %s23_s25 = sadd.s32 1, %s1220_s25   ;;  %s1734_s17 = sld [smem:[#allocation15_spill]] }
 0x45e   : > { %p20_p1 = scmp.ge.s32.totalorder %s23_s25, 11   ;;  %s1735_s13 = sld [smem:[#allocation20_spill]] }
 0x45f   : > { %s1736_s21 = sld [smem:[#allocation17_spill]]  ;;  %s1737_s22 = sld [smem:[#allocation18_spill]] }
 0x460   : > { %s1738_s29 = sld [smem:[#allocation19_spill]]  ;;  %s1739_s24 = sld [smem:[#allocation21_spill]] }
 0x461   : > { %s1740_s15 = smov %s1184_s16  ;;  %s1743_s18 = smov %s1196_s19 }
 0x462   : > { %s1744_s19 = smov %s1200_s20  ;;  %s1745_s20 = smov %s1448_s23 }
 0x463   : > { %s1741_s16 = smov %s1734_s17  ;;  %22 = sbr.rel (!%p20_p1) target bundleno = 14 (0xe), region = 116 }
 0x464   : > { %s1742_s17 = smov %s1735_s13 }
 0x466   : > { %s1746_s23 = smov %s1738_s29 }
 0x46a   :  { %585 = vsyncpa [#allocation6], 1 }
 0x46b   :  { %587 = vsyncpa [#allocation6 + $0x1], 1 }
 0x46c   :  { %588 = vsyncpa [#allocation9], 1 }
 0x46d   :  { %590 = vsyncpa [#allocation9 + $0x1], 1 }
 0x46e   :  { %591 = vsyncpa [#allocation7], 1 }
 0x46f   :  { %593 = vsyncpa [#allocation7 + $0x1], 1 }

</bundles_post_ra>
